<compile_context>
chip_gen: v7x
topology: tpu7x:2x2x1
jax: 0.10.0
libtpu: 0.0.40
codegen_flags: <defaults>
</compile_context>

<pallas_src>
import math

import jax
import jax.numpy as jnp
from jax.experimental import pallas as pl
from jax.experimental.pallas import tpu as pltpu


LANE = 128

# Per-chunk copy size for the HBM->HBM DMA path.  The data never enters VMEM,
# so this is NOT bounded by the scoped-VMEM budget on any generation — it only
# needs to be large enough to amortize per-DMA descriptor overhead and small
# enough that several chunks can be in flight concurrently.
_CHUNK_BYTES = 32 * 1024 * 1024
# Maximum number of chunk DMAs kept in flight (ring of DMA semaphores).
_DMA_DEPTH = 4


def _make_hbm_copy_kernel(chunk_bounds):
    """Build a kernel copying `x` -> `o` (both HBM) via chunked async DMAs.

    chunk_bounds: static tuple of (start_row, num_rows) along axis 0.
    Returns (kernel, semaphore_ring_depth).
    """
    n_chunks = len(chunk_bounds)
    depth = min(_DMA_DEPTH, n_chunks)

    def kernel(x_hbm, o_hbm, sems):
        def chunk_copy(idx, slot):
            start, size = chunk_bounds[idx]  # static Python ints
            return pltpu.make_async_copy(
                x_hbm.at[pl.ds(start, size)],
                o_hbm.at[pl.ds(start, size)],
                sems.at[slot],
            )

        # Prime the ring: keep up to `depth` chunk DMAs in flight so multiple
        # DMA engines pull toward the HBM roofline.
        for i in range(depth):
            chunk_copy(i, i).start()
        for i in range(n_chunks):
            slot = i % depth
            chunk_copy(i, slot).wait()
            nxt = i + depth
            if nxt < n_chunks:  # nxt % depth == slot: safe to reuse this sem
                chunk_copy(nxt, slot).start()

    return kernel, depth


def _chunk_rows(n_rows: int, row_bytes: int, row_quantum: int) -> int:
    """Rows per chunk: ~_CHUNK_BYTES worth, rounded down to `row_quantum`."""
    rows = max(1, _CHUNK_BYTES // max(row_bytes, 1))
    if rows > row_quantum:
        rows -= rows % row_quantum
    return min(rows, n_rows)


def _pallas_hbm_to_hbm_copy(x: jax.Array) -> jax.Array:
    """Exact identity copy of `x` via chunked HBM->HBM DMAs (no VMEM staging)."""
    itemsize = jnp.dtype(x.dtype).itemsize
    n_rows = x.shape[0]
    row_elems = math.prod(x.shape[1:]) if x.ndim > 1 else 1
    row_bytes = row_elems * itemsize

    crows = _chunk_rows(n_rows, row_bytes, row_quantum=8)
    chunk_bounds = tuple(
        (r, min(crows, n_rows - r)) for r in range(0, n_rows, crows)
    )
    kernel, depth = _make_hbm_copy_kernel(chunk_bounds)

    # TODO(synk): on v7x a core_map over both TensorCores could split the
    # chunk list across cores' DMA issue; a single core's chunked DMAs already
    # run at the HBM roofline for multi-MiB chunks, so this is left simple.
    return pl.pallas_call(
        kernel,
        out_shape=jax.ShapeDtypeStruct(x.shape, x.dtype),
        in_specs=[pl.BlockSpec(memory_space=pl.ANY)],
        out_specs=pl.BlockSpec(memory_space=pl.ANY),
        scratch_shapes=[pltpu.SemaphoreType.DMA((depth,))],
        cost_estimate=pl.CostEstimate(
            flops=0,
            transcendentals=0,
            bytes_accessed=2 * x.size * itemsize,
        ),
        # NOTE: no input_output_aliases — materialize=True returns a fresh
        # HBM buffer; the caller may keep using `x` with no hidden copies.
    )(x)


def reshape_forward(x: jax.Array, shape: tuple, materialize: bool = False) -> jax.Array:
    """Equivalent of Reshape(*shape).forward(x) == x.view((-1,) + shape)."""
    total = x.size
    inner = math.prod(shape) if len(shape) else 1
    assert inner > 0 and total % inner == 0, "view size incompatible with input size"
    lead = total // inner
    out_shape = (lead,) + tuple(shape)

    if not materialize:
        # Contiguous row-major reshape is metadata-only: zero HBM traffic.
        return x.reshape(out_shape)

    flat = x.reshape(-1)
    if total % LANE == 0:
        # Lane-dense 2D slab: conventional (rows, 128) shapes, chunked on rows.
        slab = flat.reshape(total // LANE, LANE)
    else:
        # Arbitrary size: copy the flat 1-D buffer directly (element-granular
        # DMA), so materialize=True never silently degrades to a plain reshape.
        slab = flat
    copied = _pallas_hbm_to_hbm_copy(slab)
    return copied.reshape(out_shape)


if __name__ == "__main__":
    key = jax.random.PRNGKey(0)
    k0, k1 = jax.random.split(key)

    # Input consistent with an NCHW activation: (2, 4, 16, 16) = 2048 elems.
    x = jax.random.normal(k0, (2, 4, 16, 16), dtype=jnp.float32)
    target_shape = (8, 32)  # Reshape(8, 32) -> output (-1, 8, 32)
    ref = x.reshape((-1,) + target_shape)

    # Default (metadata-only) path.
    y_meta = jax.block_until_ready(reshape_forward(x, target_shape))
    # Materialized path: chunked HBM->HBM DMA copy kernel.
    y_kern = jax.block_until_ready(
        reshape_forward(x, target_shape, materialize=True))

    expected_shape = (2048 // (8 * 32), 8, 32)
    assert y_meta.shape == expected_shape, y_meta.shape
    assert y_kern.shape == expected_shape, y_kern.shape
    assert y_meta.dtype == x.dtype and y_kern.dtype == x.dtype
    assert bool(jnp.array_equal(y_meta, ref))
    assert bool(jnp.array_equal(y_kern, ref))

    # Odd-sized buffer (210 elems, not a multiple of 128): exercises the
    # flat 1-D DMA fallback instead of skipping the Pallas copy.
    x2 = jax.random.normal(k1, (6, 5, 7), dtype=jnp.float32)
    ref2 = x2.reshape((-1, 7))
    y2 = jax.block_until_ready(reshape_forward(x2, (7,), materialize=True))
    assert y2.shape == (30, 7), y2.shape
    assert bool(jnp.array_equal(y2, ref2))

    print("KERNEL_OK")
</pallas_src>

<mosaic_0001>
module attributes {stable_mosaic.version = 11 : i64} {
  func.func @kernel(%arg0: memref<16x128xf32, #tpu.memory_space<any>>, %arg1: memref<16x128xf32, #tpu.memory_space<any>>, %arg2: memref<1x!tpu.dma_semaphore, #tpu.memory_space<semaphore_mem>>) attributes {dimension_semantics = [], scalar_prefetch = 0 : i64, scratch_operands = 1 : i64, tpu.core_type = #tpu.core_type<tc>} {
    %c0_i32 = arith.constant 0 : i32
    %c0_i32_0 = arith.constant 0 : i32
    %c0_i32_1 = arith.constant 0 : i32
    %0 = tpu.memref_slice %arg0[%c0_i32_0, %c0_i32_1] : memref<16x128xf32, #tpu.memory_space<any>> -> memref<16x128xf32, #tpu.memory_space<any>>
    %c0_i32_2 = arith.constant 0 : i32
    %c0_i32_3 = arith.constant 0 : i32
    %1 = tpu.memref_slice %arg1[%c0_i32_2, %c0_i32_3] : memref<16x128xf32, #tpu.memory_space<any>> -> memref<16x128xf32, #tpu.memory_space<any>>
    %2 = tpu.memref_slice %arg2[%c0_i32] : memref<1x!tpu.dma_semaphore, #tpu.memory_space<semaphore_mem>> -> memref<1x!tpu.dma_semaphore, #tpu.memory_space<semaphore_mem>>
    %3 = tpu.memref_squeeze %2 : memref<1x!tpu.dma_semaphore, #tpu.memory_space<semaphore_mem>> -> memref<!tpu.dma_semaphore, #tpu.memory_space<semaphore_mem>>
    tpu.enqueue_dma source(%0 : memref<16x128xf32, #tpu.memory_space<any>>) target(%1 : memref<16x128xf32, #tpu.memory_space<any>>) target_semaphore(%3 : memref<!tpu.dma_semaphore, #tpu.memory_space<semaphore_mem>>)
    %c0_i32_4 = arith.constant 0 : i32
    %c0_i32_5 = arith.constant 0 : i32
    %c0_i32_6 = arith.constant 0 : i32
    %4 = tpu.memref_slice %arg0[%c0_i32_5, %c0_i32_6] : memref<16x128xf32, #tpu.memory_space<any>> -> memref<16x128xf32, #tpu.memory_space<any>>
    %c0_i32_7 = arith.constant 0 : i32
    %c0_i32_8 = arith.constant 0 : i32
    %5 = tpu.memref_slice %arg1[%c0_i32_7, %c0_i32_8] : memref<16x128xf32, #tpu.memory_space<any>> -> memref<16x128xf32, #tpu.memory_space<any>>
    %6 = tpu.memref_slice %arg2[%c0_i32_4] : memref<1x!tpu.dma_semaphore, #tpu.memory_space<semaphore_mem>> -> memref<1x!tpu.dma_semaphore, #tpu.memory_space<semaphore_mem>>
    %7 = tpu.memref_squeeze %6 : memref<1x!tpu.dma_semaphore, #tpu.memory_space<semaphore_mem>> -> memref<!tpu.dma_semaphore, #tpu.memory_space<semaphore_mem>>
    tpu.wait_dma2 semaphore(%7 : memref<!tpu.dma_semaphore, #tpu.memory_space<semaphore_mem>>) src(%4 : memref<16x128xf32, #tpu.memory_space<any>>) dst(%5 : memref<16x128xf32, #tpu.memory_space<any>>)
    return
  }
}

</mosaic_0001>

<bundles_post_ra>
// kernel: tpu_custom_call.1
= control target key start
LH: loop header
LB: loop body
LE: loop exit
PB: predicated region body
PF: predicated region fallthrough
CT: control target
= control target key end

     0   :  { %s34_s6 = smov [#allocation2]   ;;  %s35_s7 = smov [#allocation3]   ;;  %s53_s0 = inlined_call_operand.hbm [shape: f32[16,128], index: 0, kind: input, shape index: {}]   ;;  %s54_s1 = inlined_call_operand.hbm [shape: f32[16,128], index: 1, kind: output, shape index: {}]  }
   0x1   :  { %s36_s8 = smov 0  }
   0x2   :  { %18 = dma.general %s53_s0, 256, %s54_s1, %s34_s6, %s35_s7, [#allocation4], %s36_s8, 0  }
   0x3   :  { %32 = dma.done.wait [#allocation2], 256 }
   0x4   :  { %33 = vsyncadd [#allocation2], 4294967040 }
   0x5   :  { %22 = vsyncmov [#allocation2] }
   0x8   :  { %s23_s13 = vpop.sfrf %22 }
   0x9   :  { %p28_p0 = scmp.ne.s32.totalorder %s23_s13, 0 }
   0xb   :  { %27 = shalt.err (%p28_p0)  }

</bundles_post_ra>
